<compile_context>
chip_gen: v7x
topology: tpu7x:2x2x1
jax: 0.10.0
libtpu: 0.0.40
codegen_flags: <defaults>
</compile_context>

<pallas_src>
import functools

import jax
import jax.numpy as jnp
from jax import lax
from jax.experimental import pallas as pl
from jax.experimental.pallas import tpu as pltpu

_LANE = 128
_SUBLANE = 8
_TILE = _LANE * _SUBLANE  # 1024 elements: one f32 vreg-aligned slab


def _cdiv(a, b):
    return -(-a // b)


def _nanproof_mse_kernel(pred_ref, label_ref, sum_ref, cnt_ref, *, rb, rows,
                         blocks_per_split):
    """Accumulate (8,128) partials of masked squared error and valid count."""
    s = pl.program_id(0)   # split (parallel) axis
    j = pl.program_id(1)   # streaming (arbitrary) axis

    @pl.when(j == 0)
    def _():
        sum_ref[...] = jnp.zeros_like(sum_ref)
        cnt_ref[...] = jnp.zeros_like(cnt_ref)

    # Global row offset of this block.  Phantom blocks past the end of the array
    # (possible when the grid is padded for the split) get row0 >= rows and are
    # fully masked out below; partial last blocks are masked row-by-row.
    row0 = (s * blocks_per_split + j) * rb
    row_ids = row0 + lax.broadcasted_iota(jnp.int32, (rb, _LANE), 0)
    inbound = row_ids < rows

    pred = pred_ref[...].astype(jnp.float32)
    label = label_ref[...]
    valid = jnp.logical_and(jnp.logical_not(jnp.isnan(label)), inbound)
    # where() selects 0 at invalid positions, so NaNs never propagate.
    diff = jnp.where(valid, pred - label.astype(jnp.float32), jnp.float32(0.0))
    sq = diff * diff

    # Fold (rb, 128) down to a single (8, 128) vreg-shaped partial with pure
    # VALU adds; no cross-lane (XLU) reduction inside the hot loop.
    sum_ref[...] += sq.reshape(rb // _SUBLANE, _SUBLANE, _LANE).sum(axis=0)
    cnt_ref[...] += valid.astype(jnp.float32).reshape(
        rb // _SUBLANE, _SUBLANE, _LANE).sum(axis=0)


@functools.partial(jax.jit, static_argnames=("block_rows", "n_split"))
def nan_proof_mse_loss(pred, label, *, block_rows=1024, n_split=2):
    """mean(MSE(pred[~isnan(label)], label[~isnan(label)])) over flattened inputs."""
    assert block_rows % _SUBLANE == 0 and block_rows > 0
    assert n_split >= 1

    pred = pred.reshape(-1)
    label = label.reshape(-1)
    # Keep bf16/f32 as-is (halves HBM reads for bf16); cast non-floats to f32.
    if not jnp.issubdtype(pred.dtype, jnp.floating):
        pred = pred.astype(jnp.float32)
    if not jnp.issubdtype(label.dtype, jnp.floating):
        label = label.astype(jnp.float32)

    n = pred.shape[0]
    # Main slab: largest multiple of 1024 elements -> reshape (free) to
    # (rows, 128) with rows % 8 == 0.  Tiny tail handled in JAX glue.
    n_main = (n // _TILE) * _TILE

    if n_main < n:
        tp = pred[n_main:].astype(jnp.float32)
        tl = label[n_main:].astype(jnp.float32)
        tv = jnp.logical_not(jnp.isnan(tl))
        td = jnp.where(tv, tp - tl, jnp.float32(0.0))
        tail_sum = jnp.sum(td * td)
        tail_cnt = jnp.sum(tv.astype(jnp.float32))
    else:
        tail_sum = jnp.float32(0.0)
        tail_cnt = jnp.float32(0.0)

    if n_main == 0:
        # Everything fit in the tail (fewer than 1024 elements).
        return (tail_sum / tail_cnt).astype(jnp.float32)

    rows = n_main // _LANE
    pred2 = (pred if n_main == n else pred[:n_main]).reshape(rows, _LANE)
    label2 = (label if n_main == n else label[:n_main]).reshape(rows, _LANE)

    rb = min(block_rows, rows)                       # rows, block_rows % 8 == 0
    blocks_total = _cdiv(rows, rb)
    n_split_eff = min(n_split, blocks_total)
    blocks_per_split = _cdiv(blocks_total, n_split_eff)

    def in_map(s, j):
        # Clamp so DMAs for phantom blocks stay in bounds; kernel masks them.
        return (jnp.minimum(s * blocks_per_split + j, blocks_total - 1), 0)

    kernel = functools.partial(
        _nanproof_mse_kernel, rb=rb, rows=rows,
        blocks_per_split=blocks_per_split)

    sum_out, cnt_out = pl.pallas_call(
        kernel,
        out_shape=(
            jax.ShapeDtypeStruct((n_split_eff, _SUBLANE, _LANE), jnp.float32),
            jax.ShapeDtypeStruct((n_split_eff, _SUBLANE, _LANE), jnp.float32),
        ),
        grid=(n_split_eff, blocks_per_split),
        in_specs=[
            pl.BlockSpec((rb, _LANE), in_map),
            pl.BlockSpec((rb, _LANE), in_map),
        ],
        out_specs=(
            pl.BlockSpec((None, _SUBLANE, _LANE), lambda s, j: (s, 0, 0)),
            pl.BlockSpec((None, _SUBLANE, _LANE), lambda s, j: (s, 0, 0)),
        ),
        compiler_params=pltpu.CompilerParams(
            dimension_semantics=("parallel", "arbitrary"),
        ),
    )(pred2, label2)

    total_sum = jnp.sum(sum_out) + tail_sum
    total_cnt = jnp.sum(cnt_out) + tail_cnt
    return (total_sum / total_cnt).astype(jnp.float32)


def _reference(pred, label):
    """Pure-JAX reference mirroring the torch module with MSELoss."""
    pred = pred.reshape(-1).astype(jnp.float32)
    label = label.reshape(-1).astype(jnp.float32)
    mask = jnp.logical_not(jnp.isnan(label))
    diff = jnp.where(mask, pred - label, 0.0)
    return jnp.sum(diff * diff) / jnp.sum(mask.astype(jnp.float32))


def _make_inputs(key, shape, nan_frac=0.2):
    k1, k2, k3 = jax.random.split(key, 3)
    pred = jax.random.normal(k1, shape, dtype=jnp.float32)
    label = jax.random.normal(k2, shape, dtype=jnp.float32)
    nan_mask = jax.random.uniform(k3, shape) < nan_frac
    label = jnp.where(nan_mask, jnp.nan, label)
    return pred, label


if __name__ == "__main__":
    key = jax.random.PRNGKey(0)
    kA, kB = jax.random.split(key)

    # Primary check: typical dense-prediction shape (B, C, H, W).
    pred, label = _make_inputs(kA, (2, 4, 16, 16))
    loss = jax.block_until_ready(nan_proof_mse_loss(pred, label))
    ref = _reference(pred, label)
    assert jnp.isfinite(loss), "loss is not finite"
    assert jnp.allclose(loss, ref, rtol=1e-5, atol=1e-6), (loss, ref)

    # Secondary check: odd shape exercising partial blocks, the 2-way split
    # (phantom-block masking) and the <1024-element JAX-glue tail.
    pred2, label2 = _make_inputs(kB, (2, 3, 37, 29))
    loss2 = jax.block_until_ready(
        nan_proof_mse_loss(pred2, label2, block_rows=16, n_split=2))
    ref2 = _reference(pred2, label2)
    assert jnp.isfinite(loss2), "loss2 is not finite"
    assert jnp.allclose(loss2, ref2, rtol=1e-5, atol=1e-6), (loss2, ref2)

    print("KERNEL_OK")
</pallas_src>

<mosaic_0001>
module attributes {stable_mosaic.version = 11 : i64} {
  func.func @_nanproof_mse_kernel(%arg0: i32, %arg1: i32, %arg2: memref<16x128xf32, #tpu.memory_space<vmem>>, %arg3: memref<16x128xf32, #tpu.memory_space<vmem>>, %arg4: memref<1x8x128xf32, #tpu.memory_space<vmem>>, %arg5: memref<1x8x128xf32, #tpu.memory_space<vmem>>) attributes {dimension_semantics = [#tpu.dimension_semantics<parallel>, #tpu.dimension_semantics<arbitrary>], iteration_bounds = array<i64: 1, 1>, scalar_prefetch = 0 : i64, scratch_operands = 0 : i64, tpu.core_type = #tpu.core_type<tc>, window_params = [{transform_indices = @transform_0, window_bounds = array<i64: 16, 128>}, {transform_indices = @transform_1, window_bounds = array<i64: 16, 128>}, {transform_indices = @transform_2, window_bounds = array<i64: 1, 8, 128>}, {transform_indices = @transform_3, window_bounds = array<i64: 1, 8, 128>}]} {
    %c0_i32 = arith.constant 0 : i32
    %0 = arith.cmpi eq, %arg1, %c0_i32 : i32
    %1 = arith.extui %0 : i1 to i32
    %c0_i32_0 = arith.constant 0 : i32
    %2 = arith.cmpi ne, %1, %c0_i32_0 : i32
    scf.if %2 {
      %cst_20 = arith.constant 0.000000e+00 : f32
      %38 = vector.broadcast %cst_20 : f32 to vector<8x128xf32>
      %c0_21 = arith.constant 0 : index
      %c0_22 = arith.constant 0 : index
      %c0_23 = arith.constant 0 : index
      %39 = vector.load %arg4[%c0_21, %c0_22, %c0_23] : memref<1x8x128xf32, #tpu.memory_space<vmem>>, vector<1x8x128xf32>
      %40 = vector.shape_cast %39 : vector<1x8x128xf32> to vector<8x128xf32>
      %41 = vector.shape_cast %38 : vector<8x128xf32> to vector<1x8x128xf32>
      tpu.vector_store %arg4[%c0_21, %c0_22, %c0_23], %41 {strides = array<i32>} : memref<1x8x128xf32, #tpu.memory_space<vmem>>, vector<1x8x128xf32>,
      %cst_24 = arith.constant 0.000000e+00 : f32
      %42 = vector.broadcast %cst_24 : f32 to vector<8x128xf32>
      %c0_25 = arith.constant 0 : index
      %c0_26 = arith.constant 0 : index
      %c0_27 = arith.constant 0 : index
      %43 = vector.load %arg5[%c0_25, %c0_26, %c0_27] : memref<1x8x128xf32, #tpu.memory_space<vmem>>, vector<1x8x128xf32>
      %44 = vector.shape_cast %43 : vector<1x8x128xf32> to vector<8x128xf32>
      %45 = vector.shape_cast %42 : vector<8x128xf32> to vector<1x8x128xf32>
      tpu.vector_store %arg5[%c0_25, %c0_26, %c0_27], %45 {strides = array<i32>} : memref<1x8x128xf32, #tpu.memory_space<vmem>>, vector<1x8x128xf32>,
    } else {
    }
    %c1_i32 = arith.constant 1 : i32
    %3 = arith.muli %arg0, %c1_i32 : i32
    %4 = arith.addi %3, %arg1 : i32
    %c16_i32 = arith.constant 16 : i32
    %5 = arith.muli %4, %c16_i32 : i32
    %6 = tpu.iota {dimensions = array<i32: 0>} : vector<16x128xi32>
    %7 = vector.broadcast %5 : i32 to vector<16x128xi32>
    %8 = arith.addi %7, %6 : vector<16x128xi32>
    %c16_i32_1 = arith.constant 16 : i32
    %9 = vector.broadcast %c16_i32_1 : i32 to vector<16x128xi32>
    %10 = arith.cmpi slt, %8, %9 : vector<16x128xi32>
    %c0 = arith.constant 0 : index
    %c0_2 = arith.constant 0 : index
    %11 = vector.load %arg2[%c0, %c0_2] : memref<16x128xf32, #tpu.memory_space<vmem>>, vector<16x128xf32>
    %c0_3 = arith.constant 0 : index
    %c0_4 = arith.constant 0 : index
    %12 = vector.load %arg3[%c0_3, %c0_4] : memref<16x128xf32, #tpu.memory_space<vmem>>, vector<16x128xf32>
    %13 = arith.cmpf one, %12, %12 : vector<16x128xf32>
    %cst = arith.constant dense<true> : vector<16x128xi1>
    %14 = arith.xori %13, %cst : vector<16x128xi1>
    %15 = arith.andi %14, %10 : vector<16x128xi1>
    %16 = arith.subf %11, %12 : vector<16x128xf32>
    %cst_5 = arith.constant 0.000000e+00 : f32
    %17 = vector.broadcast %cst_5 : f32 to vector<16x128xf32>
    %18 = arith.select %15, %16, %17 : vector<16x128xi1>, vector<16x128xf32>
    %19 = arith.mulf %18, %18 : vector<16x128xf32>
    %c0_6 = arith.constant 0 : index
    %c0_7 = arith.constant 0 : index
    %c0_8 = arith.constant 0 : index
    %20 = vector.load %arg4[%c0_6, %c0_7, %c0_8] : memref<1x8x128xf32, #tpu.memory_space<vmem>>, vector<1x8x128xf32>
    %21 = vector.shape_cast %20 : vector<1x8x128xf32> to vector<8x128xf32>
    %22 = vector.shape_cast %19 : vector<16x128xf32> to vector<2x8x128xf32>
    %cst_9 = arith.constant dense<0.000000e+00> : vector<8x128xf32>
    %23 = vector.multi_reduction <add>, %22, %cst_9 [0] : vector<2x8x128xf32> to vector<8x128xf32>
    %24 = arith.addf %21, %23 : vector<8x128xf32>
    %c0_10 = arith.constant 0 : index
    %c0_11 = arith.constant 0 : index
    %c0_12 = arith.constant 0 : index
    %25 = vector.load %arg4[%c0_10, %c0_11, %c0_12] : memref<1x8x128xf32, #tpu.memory_space<vmem>>, vector<1x8x128xf32>
    %26 = vector.shape_cast %25 : vector<1x8x128xf32> to vector<8x128xf32>
    %27 = vector.shape_cast %24 : vector<8x128xf32> to vector<1x8x128xf32>
    tpu.vector_store %arg4[%c0_10, %c0_11, %c0_12], %27 {strides = array<i32>} : memref<1x8x128xf32, #tpu.memory_space<vmem>>, vector<1x8x128xf32>,
    %c0_13 = arith.constant 0 : index
    %c0_14 = arith.constant 0 : index
    %c0_15 = arith.constant 0 : index
    %28 = vector.load %arg5[%c0_13, %c0_14, %c0_15] : memref<1x8x128xf32, #tpu.memory_space<vmem>>, vector<1x8x128xf32>
    %29 = vector.shape_cast %28 : vector<1x8x128xf32> to vector<8x128xf32>
    %30 = arith.extui %15 : vector<16x128xi1> to vector<16x128xi32>
    %31 = arith.sitofp %30 : vector<16x128xi32> to vector<16x128xf32>
    %32 = vector.shape_cast %31 : vector<16x128xf32> to vector<2x8x128xf32>
    %cst_16 = arith.constant dense<0.000000e+00> : vector<8x128xf32>
    %33 = vector.multi_reduction <add>, %32, %cst_16 [0] : vector<2x8x128xf32> to vector<8x128xf32>
    %34 = arith.addf %29, %33 : vector<8x128xf32>
    %c0_17 = arith.constant 0 : index
    %c0_18 = arith.constant 0 : index
    %c0_19 = arith.constant 0 : index
    %35 = vector.load %arg5[%c0_17, %c0_18, %c0_19] : memref<1x8x128xf32, #tpu.memory_space<vmem>>, vector<1x8x128xf32>
    %36 = vector.shape_cast %35 : vector<1x8x128xf32> to vector<8x128xf32>
    %37 = vector.shape_cast %34 : vector<8x128xf32> to vector<1x8x128xf32>
    tpu.vector_store %arg5[%c0_17, %c0_18, %c0_19], %37 {strides = array<i32>} : memref<1x8x128xf32, #tpu.memory_space<vmem>>, vector<1x8x128xf32>,
    return
  }
  func.func @transform_0(%arg0: i32, %arg1: i32) -> (i32, i32) {
    %c1_i32 = arith.constant 1 : i32
    %0 = arith.muli %arg0, %c1_i32 : i32
    %1 = arith.addi %0, %arg1 : i32
    %c0_i32 = arith.constant 0 : i32
    %2 = arith.minsi %1, %c0_i32 : i32
    %c0_i32_0 = arith.constant 0 : i32
    %c0_i32_1 = arith.constant 0 : i32
    return %2, %c0_i32_0 : i32, i32
  }
  func.func @transform_1(%arg0: i32, %arg1: i32) -> (i32, i32) {
    %c1_i32 = arith.constant 1 : i32
    %0 = arith.muli %arg0, %c1_i32 : i32
    %1 = arith.addi %0, %arg1 : i32
    %c0_i32 = arith.constant 0 : i32
    %2 = arith.minsi %1, %c0_i32 : i32
    %c0_i32_0 = arith.constant 0 : i32
    %c0_i32_1 = arith.constant 0 : i32
    return %2, %c0_i32_0 : i32, i32
  }
  func.func @transform_2(%arg0: i32, %arg1: i32) -> (i32, i32, i32) {
    %c0_i32 = arith.constant 0 : i32
    %c0_i32_0 = arith.constant 0 : i32
    %c0_i32_1 = arith.constant 0 : i32
    return %arg0, %c0_i32, %c0_i32_0 : i32, i32, i32
  }
  func.func @transform_3(%arg0: i32, %arg1: i32) -> (i32, i32, i32) {
    %c0_i32 = arith.constant 0 : i32
    %c0_i32_0 = arith.constant 0 : i32
    %c0_i32_1 = arith.constant 0 : i32
    return %arg0, %c0_i32, %c0_i32_0 : i32, i32, i32
  }
}

</mosaic_0001>

<bundles_post_ra>
// kernel: nan_proof_mse_loss.1
= control target key start
LH: loop header
LB: loop body
LE: loop exit
PB: predicated region body
PF: predicated region fallthrough
CT: control target
= control target key end

     0   :  { %vm145_vm2 = vmmov 1   ;;  %v146_v7 = vmov 0.0   ;;  %s185_s0 = inlined_call_operand.vmem [shape: f32[16,128], index: 0, kind: input, shape index: {}]   ;;  %s186_s1 = inlined_call_operand.vmem [shape: f32[16,128], index: 1, kind: input, shape index: {}]   ;;  %s187_s3 = inlined_call_operand.vmem [shape: f32[1,8,128], index: 3, kind: output, shape index: {1}]   ;;  %s188_s2 = inlined_call_operand.vmem [shape: f32[1,8,128], index: 2, kind: output, shape index: {0}]  }
   0x1   :  { %v93_v0 = vld [vmem:[%s185_s0] sm:$0xff]  ;;  %v94_v1 = vld [vmem:[%s185_s0 + $0x8] sm:$0xff] }
   0x2   :  { %v95_v2 = vld [vmem:[%s186_s1] sm:$0xff]  ;;  %v96_v3 = vld [vmem:[%s186_s1 + $0x8] sm:$0xff] }
   0x3   :  { %vm97_vm0 = vcmp.ne.f32.partialorder %v95_v2, %v95_v2  ;;  %v103_v4 = vsub.f32 %v93_v0, %v95_v2  ;;  %vm98_vm1 = vcmp.ne.f32.partialorder %v96_v3, %v96_v3  ;;  %v104_v5 = vsub.f32 %v94_v1, %v96_v3 }
   0x4   :  { %vm99_vm3 = vmxor %vm97_vm0, %vm145_vm2 }
   0x5   :  { %vm100_vm4 = vmxor %vm98_vm1, %vm145_vm2  ;;  %v105_v6 = vsel %vm99_vm3, %v103_v4, 0.0  ;;  %v141_v8 = vsel %vm99_vm3, 1.0, %v146_v7 }
   0x6   :  { %v106_v9 = vsel %vm100_vm4, %v104_v5, 0.0  ;;  %v107_v10 = vmul.f32 %v105_v6, %v105_v6  ;;  %v142_v11 = vsel %vm100_vm4, 1.0, %v146_v7 }
   0x7   :  { %v108_v12 = vmul.f32 %v106_v9, %v106_v9  ;;  %v118_v13 = vadd.f32 %v142_v11, %v141_v8 }
   0x9   :  { %v110_v14 = vadd.f32 %v108_v12, %v107_v10  ;;  %120 = vst [vmem:[%s187_s3] sm:$0xff] %v118_v13 }
   0xb   :  { %112 = vst [vmem:[%s188_s2] sm:$0xff] %v110_v14 }

</bundles_post_ra>
